<compile_context>
chip_gen: v5e
topology: v5e:2x2
jax: 0.10.0
libtpu: 0.0.40
codegen_flags: <defaults>
</compile_context>

<pallas_src>
import math
from functools import partial

import jax
import jax.numpy as jnp
from jax.experimental import pallas as pl
from jax.experimental.pallas import tpu as pltpu


def _self_attention_kernel(x_ref, wqkv_ref, bqkv_ref, wd_ref, bd_ref, o_ref,
                           *, hidden, num_heads, compute_dtype, approx_recip):
    head_dim = hidden // num_heads
    scale = 1.0 / math.sqrt(head_dim)

    x = x_ref[0].astype(compute_dtype)                       # (S, H)

    # Fused Q/K/V projection: ONE MXU matmul (full-H contraction, 3H-wide
    # output), bf16 operands / f32 accumulation, single bias add. The softmax
    # scale is folded into q here instead of scaling the score tensor.
    qkv = jnp.dot(x, wqkv_ref[...],
                  preferred_element_type=jnp.float32) + bqkv_ref[...]
    q = qkv[:, 0 * hidden:1 * hidden] * scale
    k = qkv[:, 1 * hidden:2 * hidden]
    v = qkv[:, 2 * hidden:3 * hidden]

    # Put heads on a leading batch axis (one slice+stack per tensor) so the
    # score / context matmuls run as single head-batched dot_generals with the
    # batch dim leading, contracting K directly on its last axis (no .T).
    # When head_dim >= 128 these slices are lane-aligned and free.
    def split_heads(t):
        return jnp.stack(
            [t[:, h * head_dim:(h + 1) * head_dim] for h in range(num_heads)],
            axis=0).astype(compute_dtype)                    # (nh, S, d)

    qh, kh, vh = split_heads(q), split_heads(k), split_heads(v)

    s = jnp.einsum('nqd,nkd->nqk', qh, kh,
                   preferred_element_type=jnp.float32)       # (nh, S, S)

    # Softmax: elementwise math kept in f32 (no bf16 VPU/EUP on v5e).
    s = s - jnp.max(s, axis=-1, keepdims=True)
    e = jnp.exp(s)
    denom = jnp.sum(e, axis=-1, keepdims=True)
    if approx_recip:
        p = e * pl.reciprocal(denom, approx=True)            # divide -> EUP slot
    else:
        p = e / denom                                        # exact (f32 check)

    ctx = jnp.einsum('nqk,nkd->nqd', p.astype(compute_dtype), vh,
                     preferred_element_type=jnp.float32)     # (nh, S, d)

    # Re-assemble heads on the lane axis and run the output projection as one
    # full-H-contraction dense matmul (instead of nh shallow accumulations).
    ctx_flat = jnp.concatenate(
        [ctx[h] for h in range(num_heads)], axis=1)          # (S, H)
    out = jnp.dot(ctx_flat.astype(compute_dtype), wd_ref[...],
                  preferred_element_type=jnp.float32) + bd_ref[...]

    o_ref[0] = out.astype(o_ref.dtype)


def self_attention(x, params, num_heads, compute_dtype=jnp.bfloat16):
    """x: (B, S, H) f32.  params: fused, pre-transposed f32 weights (init_params).

    Returns (B, S, H) f32 matching the PyTorch SelfAttention.forward.
    compute_dtype controls the MXU operand precision (bf16 default, f32 for
    bit-tight verification); accumulation is always f32.
    """
    B, S, H = x.shape
    assert H % num_heads == 0, "hidden size must be a multiple of num_heads"

    # MXU operands (weights) go in at compute precision; biases stay f32 and
    # are added to the f32 accumulators.
    wqkv = params["wqkv"].astype(compute_dtype)
    wd = params["wd"].astype(compute_dtype)
    bqkv = params["bqkv"].astype(jnp.float32)
    bd = params["bd"].astype(jnp.float32)

    kernel = partial(_self_attention_kernel, hidden=H, num_heads=num_heads,
                     compute_dtype=compute_dtype,
                     approx_recip=(compute_dtype != jnp.float32))
    return pl.pallas_call(
        kernel,
        grid=(B,),
        in_specs=[
            pl.BlockSpec((1, S, H), lambda b: (b, 0, 0)),     # activations stream
            pl.BlockSpec((H, 3 * H), lambda b: (0, 0)),       # fused Wqkv, resident
            pl.BlockSpec((1, 3 * H), lambda b: (0, 0)),       # fused bqkv, resident
            pl.BlockSpec((H, H), lambda b: (0, 0)),           # Wd, resident
            pl.BlockSpec((1, H), lambda b: (0, 0)),           # bd, resident
        ],
        out_specs=pl.BlockSpec((1, S, H), lambda b: (b, 0, 0)),
        out_shape=jax.ShapeDtypeStruct((B, S, H), x.dtype),
        compiler_params=pltpu.CompilerParams(
            dimension_semantics=("parallel",),                # shard batch across TCs
        ),
    )(x, wqkv, bqkv, wd, bd)


def init_params(key, hidden, dtype=jnp.float32):
    """PyTorch-nn.Linear-style uniform init, stored transposed as (in, out)
    and with Q/K/V fused along the output (lane) axis."""
    def linear(k, fan_in, fan_out):
        kw, kb = jax.random.split(k)
        bound = 1.0 / math.sqrt(fan_in)
        w = jax.random.uniform(kw, (fan_in, fan_out), dtype, -bound, bound)
        b = jax.random.uniform(kb, (1, fan_out), dtype, -bound, bound)
        return w, b

    kq, kk, kv, kd = jax.random.split(key, 4)
    wq, bq = linear(kq, hidden, hidden)
    wk, bk = linear(kk, hidden, hidden)
    wv, bv = linear(kv, hidden, hidden)
    wd, bd = linear(kd, hidden, hidden)
    return {
        "wqkv": jnp.concatenate([wq, wk, wv], axis=1),   # (H, 3H)
        "bqkv": jnp.concatenate([bq, bk, bv], axis=1),   # (1, 3H)
        "wd": wd,                                        # (H, H)
        "bd": bd,                                        # (1, H)
    }


def reference_forward(x, p, num_heads):
    """Pure-JAX f32 reference of the PyTorch forward (for the correctness check)."""
    B, S, H = x.shape
    d = H // num_heads
    qkv = jnp.einsum("bsh,hf->bsf", x, p["wqkv"]) + p["bqkv"]
    q, k, v = qkv[..., :H], qkv[..., H:2 * H], qkv[..., 2 * H:]

    def split_heads(t):
        return t.reshape(B, S, num_heads, d).transpose(0, 2, 1, 3)   # (B, nh, S, d)

    qh, kh, vh = split_heads(q), split_heads(k), split_heads(v)
    scores = jnp.einsum("bnqd,bnkd->bnqk", qh, kh) / math.sqrt(d)
    probs = jax.nn.softmax(scores, axis=-1)
    ctx = jnp.einsum("bnqk,bnkd->bnqd", probs, vh)
    ctx = ctx.transpose(0, 2, 1, 3).reshape(B, S, H)
    return ctx @ p["wd"] + p["bd"]


if __name__ == "__main__":
    key = jax.random.PRNGKey(0)
    k_param, k_x = jax.random.split(key)

    batch, seq, hidden, num_heads = 2, 8, 32, 4
    params = init_params(k_param, hidden)
    x = jax.random.normal(k_x, (batch, seq, hidden), dtype=jnp.float32)

    y_ref = reference_forward(x, params, num_heads)

    # 1) Bit-tight semantic check with f32 MXU operands (exact softmax divide).
    y_f32 = jax.block_until_ready(
        self_attention(x, params, num_heads, compute_dtype=jnp.float32))
    assert y_f32.shape == (batch, seq, hidden)
    assert jnp.allclose(y_f32, y_ref, atol=1e-4, rtol=1e-4)

    # 2) Fast path: bf16 MXU operands + f32 accumulation + approx reciprocal.
    #    Tolerance loosened for bf16 operand rounding (per review note).
    y = jax.block_until_ready(self_attention(x, params, num_heads))
    assert y.shape == (batch, seq, hidden)
    assert jnp.allclose(y, y_ref, atol=5e-2, rtol=5e-2)

    print("KERNEL_OK")
</pallas_src>

<mosaic_0001>
module attributes {stable_mosaic.version = 11 : i64} {
  func.func @_self_attention_kernel(%arg0: i32, %arg1: memref<1x8x32xf32, #tpu.memory_space<vmem>>, %arg2: memref<32x96xf32, #tpu.memory_space<vmem>>, %arg3: memref<1x96xf32, #tpu.memory_space<vmem>>, %arg4: memref<32x32xf32, #tpu.memory_space<vmem>>, %arg5: memref<1x32xf32, #tpu.memory_space<vmem>>, %arg6: memref<1x8x32xf32, #tpu.memory_space<vmem>>) attributes {dimension_semantics = [#tpu.dimension_semantics<parallel>], iteration_bounds = array<i64: 2>, scalar_prefetch = 0 : i64, scratch_operands = 0 : i64, tpu.core_type = #tpu.core_type<tc>, window_params = [{transform_indices = @transform_0, window_bounds = array<i64: 1, 8, 32>}, {pipeline_mode = #tpu.pipeline_mode<synchronous>, transform_indices = @transform_1, window_bounds = array<i64: 32, 96>}, {pipeline_mode = #tpu.pipeline_mode<synchronous>, transform_indices = @transform_2, window_bounds = array<i64: 1, 96>}, {pipeline_mode = #tpu.pipeline_mode<synchronous>, transform_indices = @transform_3, window_bounds = array<i64: 32, 32>}, {pipeline_mode = #tpu.pipeline_mode<synchronous>, transform_indices = @transform_4, window_bounds = array<i64: 1, 32>}, {transform_indices = @transform_5, window_bounds = array<i64: 1, 8, 32>}]} {
    %c0 = arith.constant 0 : index
    %c0_0 = arith.constant 0 : index
    %c0_1 = arith.constant 0 : index
    %0 = vector.load %arg1[%c0, %c0_0, %c0_1] : memref<1x8x32xf32, #tpu.memory_space<vmem>>, vector<1x8x32xf32>
    %1 = vector.shape_cast %0 : vector<1x8x32xf32> to vector<8x32xf32>
    %c0_2 = arith.constant 0 : index
    %c0_3 = arith.constant 0 : index
    %2 = vector.load %arg2[%c0_2, %c0_3] : memref<32x96xf32, #tpu.memory_space<vmem>>, vector<32x96xf32>
    %cst = arith.constant dense<0.000000e+00> : vector<8x96xf32>
    %3 = tpu.matmul %1, %2, %cst {dimension_numbers = #tpu.dot_dimension_numbers<[1], [0], [0], [1], [0, 0, 1, 1], [], []>} : vector<8x32xf32>, vector<32x96xf32>, vector<8x96xf32> -> vector<8x96xf32>
    %c0_4 = arith.constant 0 : index
    %c0_5 = arith.constant 0 : index
    %4 = vector.load %arg3[%c0_4, %c0_5] : memref<1x96xf32, #tpu.memory_space<vmem>>, vector<1x96xf32>
    %5 = vector.broadcast %4 : vector<1x96xf32> to vector<8x96xf32>
    %6 = arith.addf %3, %5 : vector<8x96xf32>
    %7 = vector.extract_strided_slice %6 {offsets = [0, 0], sizes = [8, 32], strides = [1, 1]} : vector<8x96xf32> to vector<8x32xf32>
    %cst_6 = arith.constant 0.353553385 : f32
    %8 = vector.broadcast %cst_6 : f32 to vector<8x32xf32>
    %9 = arith.mulf %7, %8 : vector<8x32xf32>
    %10 = vector.extract_strided_slice %6 {offsets = [0, 32], sizes = [8, 32], strides = [1, 1]} : vector<8x96xf32> to vector<8x32xf32>
    %11 = vector.extract_strided_slice %6 {offsets = [0, 64], sizes = [8, 32], strides = [1, 1]} : vector<8x96xf32> to vector<8x32xf32>
    %12 = vector.extract_strided_slice %9 {offsets = [0, 0], sizes = [8, 8], strides = [1, 1]} : vector<8x32xf32> to vector<8x8xf32>
    %13 = vector.extract_strided_slice %9 {offsets = [0, 8], sizes = [8, 8], strides = [1, 1]} : vector<8x32xf32> to vector<8x8xf32>
    %14 = vector.extract_strided_slice %9 {offsets = [0, 16], sizes = [8, 8], strides = [1, 1]} : vector<8x32xf32> to vector<8x8xf32>
    %15 = vector.extract_strided_slice %9 {offsets = [0, 24], sizes = [8, 8], strides = [1, 1]} : vector<8x32xf32> to vector<8x8xf32>
    %16 = vector.shape_cast %12 : vector<8x8xf32> to vector<1x8x8xf32>
    %17 = vector.shape_cast %13 : vector<8x8xf32> to vector<1x8x8xf32>
    %18 = vector.shape_cast %14 : vector<8x8xf32> to vector<1x8x8xf32>
    %19 = vector.shape_cast %15 : vector<8x8xf32> to vector<1x8x8xf32>
    %20 = tpu.concatenate %16, %17, %18, %19 in 0 : vector<1x8x8xf32>, vector<1x8x8xf32>, vector<1x8x8xf32>, vector<1x8x8xf32> -> vector<4x8x8xf32>
    %21 = vector.extract_strided_slice %10 {offsets = [0, 0], sizes = [8, 8], strides = [1, 1]} : vector<8x32xf32> to vector<8x8xf32>
    %22 = vector.extract_strided_slice %10 {offsets = [0, 8], sizes = [8, 8], strides = [1, 1]} : vector<8x32xf32> to vector<8x8xf32>
    %23 = vector.extract_strided_slice %10 {offsets = [0, 16], sizes = [8, 8], strides = [1, 1]} : vector<8x32xf32> to vector<8x8xf32>
    %24 = vector.extract_strided_slice %10 {offsets = [0, 24], sizes = [8, 8], strides = [1, 1]} : vector<8x32xf32> to vector<8x8xf32>
    %25 = vector.shape_cast %21 : vector<8x8xf32> to vector<1x8x8xf32>
    %26 = vector.shape_cast %22 : vector<8x8xf32> to vector<1x8x8xf32>
    %27 = vector.shape_cast %23 : vector<8x8xf32> to vector<1x8x8xf32>
    %28 = vector.shape_cast %24 : vector<8x8xf32> to vector<1x8x8xf32>
    %29 = tpu.concatenate %25, %26, %27, %28 in 0 : vector<1x8x8xf32>, vector<1x8x8xf32>, vector<1x8x8xf32>, vector<1x8x8xf32> -> vector<4x8x8xf32>
    %30 = vector.extract_strided_slice %11 {offsets = [0, 0], sizes = [8, 8], strides = [1, 1]} : vector<8x32xf32> to vector<8x8xf32>
    %31 = vector.extract_strided_slice %11 {offsets = [0, 8], sizes = [8, 8], strides = [1, 1]} : vector<8x32xf32> to vector<8x8xf32>
    %32 = vector.extract_strided_slice %11 {offsets = [0, 16], sizes = [8, 8], strides = [1, 1]} : vector<8x32xf32> to vector<8x8xf32>
    %33 = vector.extract_strided_slice %11 {offsets = [0, 24], sizes = [8, 8], strides = [1, 1]} : vector<8x32xf32> to vector<8x8xf32>
    %34 = vector.shape_cast %30 : vector<8x8xf32> to vector<1x8x8xf32>
    %35 = vector.shape_cast %31 : vector<8x8xf32> to vector<1x8x8xf32>
    %36 = vector.shape_cast %32 : vector<8x8xf32> to vector<1x8x8xf32>
    %37 = vector.shape_cast %33 : vector<8x8xf32> to vector<1x8x8xf32>
    %38 = tpu.concatenate %34, %35, %36, %37 in 0 : vector<1x8x8xf32>, vector<1x8x8xf32>, vector<1x8x8xf32>, vector<1x8x8xf32> -> vector<4x8x8xf32>
    "tpu.trace_start"() <{level = 10 : i32, message = "nqd,nkd->nqk"}> : () -> ()
    %cst_7 = arith.constant dense<0.000000e+00> : vector<4x8x8xf32>
    %39 = tpu.matmul %20, %29, %cst_7 {dimension_numbers = #tpu.dot_dimension_numbers<[2], [2], [1], [1], [0, 0, 0, 1, 1, 1], [0], [0]>} : vector<4x8x8xf32>, vector<4x8x8xf32>, vector<4x8x8xf32> -> vector<4x8x8xf32>
    "tpu.trace_stop"() : () -> ()
    %cst_8 = arith.constant dense<0xFF800000> : vector<4x8xf32>
    %40 = vector.multi_reduction <maximumf>, %39, %cst_8 [2] : vector<4x8x8xf32> to vector<4x8xf32>
    %41 = vector.shape_cast %40 : vector<4x8xf32> to vector<4x8x1xf32>
    %42 = vector.broadcast %41 : vector<4x8x1xf32> to vector<4x8x8xf32>
    %43 = arith.subf %39, %42 : vector<4x8x8xf32>
    %44 = math.exp %43 : vector<4x8x8xf32>
    %cst_9 = arith.constant dense<0.000000e+00> : vector<4x8xf32>
    %45 = vector.multi_reduction <add>, %44, %cst_9 [2] : vector<4x8x8xf32> to vector<4x8xf32>
    %46 = vector.shape_cast %45 : vector<4x8xf32> to vector<4x8x1xf32>
    %47 = vector.broadcast %46 : vector<4x8x1xf32> to vector<4x8x8xf32>
    %48 = arith.divf %44, %47 : vector<4x8x8xf32>
    "tpu.trace_start"() <{level = 10 : i32, message = "nqk,nkd->nqd"}> : () -> ()
    %cst_10 = arith.constant dense<0.000000e+00> : vector<4x8x8xf32>
    %49 = tpu.matmul %48, %38, %cst_10 {dimension_numbers = #tpu.dot_dimension_numbers<[2], [1], [1], [2], [0, 0, 0, 1, 1, 2], [0], [0]>} : vector<4x8x8xf32>, vector<4x8x8xf32>, vector<4x8x8xf32> -> vector<4x8x8xf32>
    "tpu.trace_stop"() : () -> ()
    %50 = vector.extract_strided_slice %49 {offsets = [0, 0, 0], sizes = [1, 8, 8], strides = [1, 1, 1]} : vector<4x8x8xf32> to vector<1x8x8xf32>
    %51 = vector.shape_cast %50 : vector<1x8x8xf32> to vector<8x8xf32>
    %52 = vector.extract_strided_slice %49 {offsets = [1, 0, 0], sizes = [1, 8, 8], strides = [1, 1, 1]} : vector<4x8x8xf32> to vector<1x8x8xf32>
    %53 = vector.shape_cast %52 : vector<1x8x8xf32> to vector<8x8xf32>
    %54 = vector.extract_strided_slice %49 {offsets = [2, 0, 0], sizes = [1, 8, 8], strides = [1, 1, 1]} : vector<4x8x8xf32> to vector<1x8x8xf32>
    %55 = vector.shape_cast %54 : vector<1x8x8xf32> to vector<8x8xf32>
    %56 = vector.extract_strided_slice %49 {offsets = [3, 0, 0], sizes = [1, 8, 8], strides = [1, 1, 1]} : vector<4x8x8xf32> to vector<1x8x8xf32>
    %57 = vector.shape_cast %56 : vector<1x8x8xf32> to vector<8x8xf32>
    %58 = tpu.concatenate %51, %53, %55, %57 in 1 : vector<8x8xf32>, vector<8x8xf32>, vector<8x8xf32>, vector<8x8xf32> -> vector<8x32xf32>
    %c0_11 = arith.constant 0 : index
    %c0_12 = arith.constant 0 : index
    %59 = vector.load %arg4[%c0_11, %c0_12] : memref<32x32xf32, #tpu.memory_space<vmem>>, vector<32x32xf32>
    %cst_13 = arith.constant dense<0.000000e+00> : vector<8x32xf32>
    %60 = tpu.matmul %58, %59, %cst_13 {dimension_numbers = #tpu.dot_dimension_numbers<[1], [0], [0], [1], [0, 0, 1, 1], [], []>} : vector<8x32xf32>, vector<32x32xf32>, vector<8x32xf32> -> vector<8x32xf32>
    %c0_14 = arith.constant 0 : index
    %c0_15 = arith.constant 0 : index
    %61 = vector.load %arg5[%c0_14, %c0_15] : memref<1x32xf32, #tpu.memory_space<vmem>>, vector<1x32xf32>
    %62 = vector.broadcast %61 : vector<1x32xf32> to vector<8x32xf32>
    %63 = arith.addf %60, %62 : vector<8x32xf32>
    %c0_16 = arith.constant 0 : index
    %c0_17 = arith.constant 0 : index
    %c0_18 = arith.constant 0 : index
    %64 = vector.load %arg6[%c0_16, %c0_17, %c0_18] : memref<1x8x32xf32, #tpu.memory_space<vmem>>, vector<1x8x32xf32>
    %65 = vector.shape_cast %64 : vector<1x8x32xf32> to vector<8x32xf32>
    %66 = vector.shape_cast %63 : vector<8x32xf32> to vector<1x8x32xf32>
    tpu.vector_store %arg6[%c0_16, %c0_17, %c0_18], %66 {strides = array<i32>} : memref<1x8x32xf32, #tpu.memory_space<vmem>>, vector<1x8x32xf32>,
    return
  }
  func.func @transform_0(%arg0: i32) -> (i32, i32, i32) {
    %c0_i32 = arith.constant 0 : i32
    %c0_i32_0 = arith.constant 0 : i32
    %c0_i32_1 = arith.constant 0 : i32
    return %arg0, %c0_i32, %c0_i32_0 : i32, i32, i32
  }
  func.func @transform_1(%arg0: i32) -> (i32, i32) {
    %c0_i32 = arith.constant 0 : i32
    %c0_i32_0 = arith.constant 0 : i32
    %c0_i32_1 = arith.constant 0 : i32
    return %c0_i32, %c0_i32_0 : i32, i32
  }
  func.func @transform_2(%arg0: i32) -> (i32, i32) {
    %c0_i32 = arith.constant 0 : i32
    %c0_i32_0 = arith.constant 0 : i32
    %c0_i32_1 = arith.constant 0 : i32
    return %c0_i32, %c0_i32_0 : i32, i32
  }
  func.func @transform_3(%arg0: i32) -> (i32, i32) {
    %c0_i32 = arith.constant 0 : i32
    %c0_i32_0 = arith.constant 0 : i32
    %c0_i32_1 = arith.constant 0 : i32
    return %c0_i32, %c0_i32_0 : i32, i32
  }
  func.func @transform_4(%arg0: i32) -> (i32, i32) {
    %c0_i32 = arith.constant 0 : i32
    %c0_i32_0 = arith.constant 0 : i32
    %c0_i32_1 = arith.constant 0 : i32
    return %c0_i32, %c0_i32_0 : i32, i32
  }
  func.func @transform_5(%arg0: i32) -> (i32, i32, i32) {
    %c0_i32 = arith.constant 0 : i32
    %c0_i32_0 = arith.constant 0 : i32
    %c0_i32_1 = arith.constant 0 : i32
    return %arg0, %c0_i32, %c0_i32_0 : i32, i32, i32
  }
}

</mosaic_0001>

<bundles_post_ra>
// kernel: tpu_custom_call.1
= control target key start
LH: loop header
LB: loop body
LE: loop exit
PB: predicated region body
PF: predicated region fallthrough
CT: control target
= control target key end

     0   :  { %10 = vsyncpa [#allocation3], 0  ;;  %s1325_s0 = inlined_call_operand.hbm [shape: f32[2,8,32], index: 0, kind: input, shape index: {}]   ;;  %s1326_s1 = inlined_call_operand.hbm [shape: f32[32,96], index: 1, kind: input, shape index: {}]   ;;  %s1327_s2 = inlined_call_operand.vmem [shape: f32[1,96], index: 2, kind: input, shape index: {}]   ;;  %s1328_s3 = inlined_call_operand.hbm [shape: f32[32,32], index: 3, kind: input, shape index: {}]   ;;  %s1329_s4 = inlined_call_operand.vmem [shape: f32[1,32], index: 4, kind: input, shape index: {}]   ;;  %s1330_s5 = inlined_call_operand.hbm [shape: f32[2,8,32], index: 5, kind: output, shape index: {}]  }
   0x1   :  { %12 = vsyncpa [#allocation3 + $0x1], 0 }
   0x2   :  { %13 = vsyncpa [#allocation6], 0 }
   0x3   :  { %14 = vsyncpa [#allocation4], 0 }
   0x4   :  { %16 = vsyncpa [#allocation4 + $0x1], 0  ;;  %s1116_s18 = smov 0   ;;  %s1118_s19 = smov 0  }
   0x5   :  { %s1120_s20 = smov 0   ;;  %s1122_s21 = smov 0  }
   0x6 LB: > { %s174_s24 = sshll.u32 %s1326_s1, 4  ;;  %s1140_s25 = sadd.s32 4294967295, %s1072_s21   ;;  %s1072_s21 = sphi %s1122_s21, %s1343_s21   ;;  %s1068_s20 = sphi %s1120_s20, %s1342_s20   ;;  %s1064_s19 = sphi %s1118_s19, %s1341_s19   ;;  %s1060_s18 = sphi %s1116_s18, %s1340_s18   ;;  %s175_s24 = int_to_ptr.hbm [resolvable:$true] %s174_s24 }
   0x7   : > { %p783_p0 = scmp.ge.s32.totalorder %s1072_s21, 1  ;;  %p43_p1 = scmp.eq.s32.totalorder %s1140_s25, 0 }
   0x8   : > { %p163_p2 = scmp.lt.s32.totalorder %s1072_s21, 3  ;;  %s1074_s27 = smov [#allocation5]  }
   0x9   : > { %s176_s28 = sshll.u32 %s1074_s27, 4  ;;  %s191_s6 = sshll.u32 %s1328_s3, 4  ;;  %s177_s28 = int_to_ptr.vmem [resolvable:$true] %s176_s28  ;;  %s192_s6 = int_to_ptr.hbm [resolvable:$true] %s191_s6 }
   0xa   : > { %p1145_p3 = pnand %p783_p0, %p163_p2  ;;  %s1075_s7 = smov [#allocation7]  }
   0xb   : > { %s193_s8 = sshll.u32 %s1075_s7, 4  ;;  %s1076_s9 = smov 128   ;;  %s194_s8 = int_to_ptr.vmem [resolvable:$true] %s193_s8 }
   0xc   : > { %p824_p4 = pneg %p1145_p3  ;;  %s1077_s10 = smov 8  }
   0xd   : > { %s782_s11 = sadd.s32 4294967294, %s1072_s21   ;;  %s1159_s12 = sadd.s32 1, %s1072_s21  }
   0xe   : > { %p825_p6 = pnand %p824_p4, %p43_p1  ;;  %s26_s13 = ssub.s32 %s1072_s21, %s1159_s12 }
   0xf   : > { %s29_s14 = sadd.s32 1, %s1068_s20  ;;  %p27_p7 = scmp.eq.s32.totalorder %s26_s13, 0 }
  0x10   : > { %827 = dma.hbm_to_vmem [thread:$0]  (!%p825_p6), %s175_s24, 512, %s177_s28, [#allocation6], %s1076_s9, %s1076_s9, %s1077_s10  }
  0x11   : > { %830 = dma.hbm_to_vmem [thread:$0]  (!%p825_p6), %s192_s6, 512, %s194_s8, [#allocation6], %s1076_s9, %s1076_s9, %s1077_s10  }
  0x12   : > { %p36_p8 = scmp.ne.s32.totalorder %s1068_s20, %s1064_s19  ;;  %p37_p9 = scmp.eq.s32.totalorder %s1072_s21, 0 }
  0x13   : > { %p42_p10 = scmp.ne.s32.totalorder %s1064_s19, %s1060_s18  ;;  %p150_p13 = scmp.eq.s32.totalorder %s1140_s25, 1 }
  0x14   : > { %s1170_s15 = scalar_select %p27_p7, %s1068_s20, %s29_s14  }
  0x15   : > { %p1172_p11 = por %p37_p9, %p36_p8  ;;  %p1178_p12 = por %p43_p1, %p42_p10 }
  0x16   : > { %p156_p0 = scmp.eq.s32.totalorder %s782_s11, 1  ;;  %p841_p2 = scmp.lt.s32.totalorder %s1072_s21, 2 }
  0x17   : > { %s210_s22 = sand.u32 1, %s1068_s20   ;;  %p1185_p4 = por %p150_p13, %p36_p8 }
  0x18   : > { %p1189_p6 = por %p156_p0, %p42_p10  ;;  %s787_s27 = sshll.u32 %s210_s22, 3 }
  0x19   : > { %s788_s28 = sshll.u32 %s1072_s21, 3  ;;  %s214_s7 = scalar_lea.vmem [#allocation2], %s787_s27 }
  0x1a   : > { %s218_s6 = scalar_lea.hbm %s1325_s0, %s788_s28  ;;  %s222_s8 = sshll.u32 %s214_s7, 4  ;;  %s223_s8 = int_to_ptr.vmem [resolvable:$true] %s222_s8 }
  0x1b   : > { %s220_s9 = sshll.u32 %s218_s6, 4  ;;  %p1199_p7 = pnand %p841_p2, %p1172_p11  ;;  %s221_s9 = int_to_ptr.hbm [resolvable:$true] %s220_s9 }
  0x1c   : > { %s211_s11 = scalar_lea.sflag [#allocation3], %s210_s22  ;;  %s972_s13 = sshra.s32 %s221_s9, 4  ;;  %s973_s13 = int_to_ptr.hbm [resolvable:$true] %s972_s13 }
  0x1d   : > { %s974_s14 = scalar_lea.hbm %s973_s13, 8  ;;  %p976_p9 = pneg %p1199_p7 }
  0x1e   : > { %p975_p8 = scmp.ne.s32.totalorder %s973_s13, %s974_s14  ;;  %s979_s29 = scalar_lea.hbm %s1325_s0, 16 }
  0x1f   : > { %p980_p11 = scmp.lt.s32.totalorder %s973_s13, %s1325_s0  ;;  %p981_p0 = scmp.lt.s32.totalorder %s979_s29, %s974_s14 }
  0x20   : > { %p977_p10 = pnand %p976_p9, %p975_p8 }
  0x21   : > { %p982_p2 = por %p981_p0, %p980_p11 }
  0x22   : > { %p978_p13 = pneg %p977_p10 }
  0x24   : > { %p983_p5 = pnand %p982_p2, %p978_p13 }
  0x26   : > { %986 = shalt.err (!%p983_p5)
}
  0x27   : > { %834 = dma.hbm_to_vmem [thread:$0]  (!%p1199_p7), %s221_s9, 128, %s223_s8, %s211_s11  }
  0x28   : > { %231 = sbr.rel (%p1145_p3) target bundleno = 1212 (0x4bc), region = 40  ;;  %s1216_s22 = sand.u32 (!%p1145_p3), 1, %s1064_s19  }
  0x29   : > { %s790_s6 = sshll.u32 (!%p1145_p3), %s1216_s22, 3  ;;  %s234_s7 = scalar_lea.sflag (!%p1145_p3), [#allocation3], %s1216_s22 }
  0x2a   : > { %s237_s13 = scalar_lea.vmem (!%p1145_p3), [#allocation2], %s790_s6 }
  0x2d   : > { %1047 = dma.done.wait (%p1178_p12), %s234_s7, 128  }
  0x2e   : > { %1049 = vsyncadd (%p1178_p12), %s234_s7, 4294967168 }
  0x2f   : > { %1051 = dma.done.wait (%p43_p1), [#allocation6], 1024  }
  0x30   : > { %1053 = vsyncadd (%p43_p1), [#allocation6], 4294966272  ;;  %v279_v0 = vld [vmem:[#allocation5 + $0x18] sm:$0xff]  ;;  %v278_v1 = vld [vmem:[#allocation5 + $0x10] sm:$0xff]  ;;  %vm284_vm0 = vcmask 261120   ;;  %s1078_s8 = smov 104  }
  0x31   : > { %300 = vmatpush.msra.mxu0 %v279_v0  ;;  %v277_v2 = vld [vmem:[#allocation5 + $0x8] sm:$0xff]  ;;  %v276_v3 = vld [vmem:[#allocation5] sm:$0xff]  ;;  %v275_v4 = vld [vmem:[%s237_s13] sm:$0xff]  ;;  %s1079_s9 = smov 120   ;;  %s1080_s10 = smov 112   ;;  %vm325_vm1 = vcmask 64512  }
  0x32   : > { %v894_v5 = vld [vmem:[%s1327_s2] ss:$0 sm:$0xff]  ;;  %s1081_s11 = smov 96   ;;  %s1082_s14 = smov 64  }
  0x33   : > { %301 = vmatpush.msra.mxu0 %v278_v1  ;;  %s1083_s27 = smov 16   ;;  %s1084_s28 = smov 8  }
  0x34   : > { %s1085_s29 = smov 24   ;;  %s809_s30 = sshll.u32 %s1140_s25, 3 }
  0x35   : > { %302 = vmatpush.msra.mxu0 %v277_v2  ;;  %s688_s13 = scalar_lea.hbm %s1330_s5, %s809_s30  ;;  %s678_s25 = scalar_lea.sflag [#allocation4], %s1216_s22 }
  0x37   : > { %303 = vmatpush.msra.mxu0 %v276_v3 }
  0x38   : > { %794 = vmatmul.msk.f32.vlgmr.msra.gmra.mxu0 %vm284_vm0, %v275_v4 }
  0xb5   : > { %v305_v6 = vpop.f32.mrf.mxu0 }
  0xb6   : > { %v1234_v7 = vadd.f32 %v894_v5, %v305_v6 }
  0xb8   : > { %321 = vrot.lane.b32.xlu1 %v1234_v7, %s1078_s8  ;;  %317 = vrot.lane.b32.xlu0 %v1234_v7, %s1079_s9  ;;  %v308_v8 = vmul.f32 0.35355338, %v1234_v7 }
  0xba   : > { %310 = vrot.lane.b32.xlu2 %v308_v8, %s1079_s9 }
  0xc0   : > { %319 = vrot.lane.b32.xlu0 %v1234_v7, %s1080_s10 }
  0xc2   : > { %323 = vrot.lane.b32.xlu2 %v1234_v7, %s1081_s11 }
 0x114   : > { %v311_v9 = vpop.permute.xlu2 %310 }
 0x11c   : > { %v324_v10 = vpop.permute.xlu2 %323 }
 0x11d   : > { %795 = vmatpush.xpose.msk.msra.mxu1 %vm325_vm1, %v324_v10 }
 0x120   : > { %796 = vmatmul.msk.f32.vlgmr.msra.gmra.mxu1 %vm325_vm1, %v308_v8 }
 0x12a   : > { %v322_v11 = vpop.permute.xlu1 %321  ;;  %v318_v12 = vpop.permute.xlu0 %317 }
 0x12b   : > { %350 = vrot.lane.b32.xlu1 %v318_v12, %s1081_s11  ;;  %402 = vrot.lane.b32.xlu2 %v322_v11, %s1081_s11 }
 0x132   : > { %v320_v13 = vpop.permute.xlu0 %319 }
 0x133   : > { %376 = vrot.lane.b32.xlu0 %v320_v13, %s1081_s11  ;;  %312 = vrot.lane.b32.xlu1 %v308_v8, %s1080_s10  ;;  %v889_v47 = vpack.i.bf16 %v322_v11, %v320_v13  ;;  %s692_s10 = sshll.u32 %s688_s13, 4  ;;  %s693_s10 = int_to_ptr.hbm [resolvable:$true] %s692_s10 }
 0x134   : > { %s1016_s11 = sshra.s32 %s693_s10, 4  ;;  %s1017_s11 = int_to_ptr.hbm [resolvable:$true] %s1016_s11 }
 0x135   : > { %p1023_p12 = scmp.lt.s32.totalorder %s1017_s11, %s1330_s5 }
 0x13b   : > { %314 = vrot.lane.b32.xlu0 %v308_v8, %s1078_s8  ;;  %s274_s8 = scalar_lea.vmem [#allocation8], %s790_s6  ;;  %s1022_s6 = scalar_lea.hbm %s1330_s5, 16 }
 0x13c   : > { %s690_s9 = sshll.u32 %s274_s8, 4  ;;  %s691_s9 = int_to_ptr.vmem [resolvable:$true] %s690_s9 }
 0x185   : > { %v403_v14 = vpop.permute.xlu2 %402 }
 0x186   : > { %801 = vmatpush.xpose.msk.msrb.mxu1 %vm325_vm1, %v403_v14 }
 0x19d   : > { %v351_v15 = vpop.permute.xlu1 %350  ;;  %v347_v19 = vpop.f32.mrf.mxu1 }
 0x19e   : > { %797 = vmatpush.xpose.msk.msra.mxu2 %vm325_vm1, %v351_v15  ;;  %v428_v26 = vsel %vm325_vm1, %v347_v19, -inf }
 0x1a1   : > { %798 = vmatmul.msk.f32.vlgmr.msra.gmra.mxu2 %vm325_vm1, %v311_v9 }
 0x1a5   : > { %v377_v16 = vpop.permute.xlu0 %376  ;;  %v313_v17 = vpop.permute.xlu1 %312 }
 0x1a6   : > { %799 = vmatpush.xpose.msk.msra.mxu3 %vm325_vm1, %v377_v16 }
 0x1a9   : > { %800 = vmatmul.msk.f32.vlgmr.msra.gmra.mxu3 %vm325_vm1, %v313_v17 }
 0x1ad   : > { %v315_v18 = vpop.permute.xlu0 %314 }
 0x1ae   : > { %802 = vmatmul.msk.f32.vlgmr.msrb.gmra.mxu1 %vm325_vm1, %v315_v18 }
 0x224   : > { %v373_v20 = vpop.f32.mrf.mxu2 }
 0x225   : > { %v431_v21 = vsel %vm325_vm1, %v373_v20, -inf }
 0x226   : > { %432 = vmax.xlane.f32.xlu1 %v431_v21 }
 0x22b   : > { %v425_v22 = vpop.f32.mrf.mxu1 }
 0x22c   : > { %v399_v23 = vpop.f32.mrf.mxu3  ;;  %v437_v24 = vsel %vm325_vm1, %v425_v22, -inf }
 0x22d   : > { %438 = vmax.xlane.f32.xlu0 %v437_v24  ;;  %v434_v25 = vsel %vm325_vm1, %v399_v23, -inf }
 0x22e   : > { %435 = vmax.xlane.f32.xlu2 %v434_v25 }
 0x236   : > { %429 = vmax.xlane.f32.xlu2 %v428_v26 }
 0x299   : > { %v433_v27 = vpop.xlane.xlu1 %432 }
 0x29a   : > { %v441_v28 = vsub.f32 %v373_v20, %v433_v27 }
 0x29c   : > { %v446_v29 = vmul.f32 1.442695, %v441_v28 }
 0x29e   : > { %896 = vpow2.f32 %v446_v29 }
 0x2a0   : > { %v439_v30 = vpop.xlane.xlu0 %438 }
 0x2a1   : > { %v443_v31 = vsub.f32 %v425_v22, %v439_v30  ;;  %v436_v32 = vpop.xlane.xlu2 %435 }
 0x2a2   : > { %v442_v33 = vsub.f32 %v399_v23, %v436_v32 }
 0x2a3   : > { %v450_v34 = vmul.f32 1.442695, %v443_v31 }
 0x2a4   : > { %v1253_v35 = vpop.eup %896  ;;  %v448_v36 = vmul.f32 1.442695, %v442_v33 }
 0x2a5   : > { %898 = vpow2.f32 %v450_v34  ;;  %v455_v37 = vsel %vm325_vm1, %v1253_v35, 0.0 }
 0x2a6   : > { %900 = vpow2.f32 %v448_v36  ;;  %456 = vadd.xlane.f32.xlu1 %v455_v37 }
 0x2a9   : > { %v430_v38 = vpop.xlane.xlu2 %429 }
 0x2aa   : > { %v440_v39 = vsub.f32 %v347_v19, %v430_v38 }
 0x2ab   : > { %v1257_v40 = vpop.eup %898 }
 0x2ac   : > { %v1259_v41 = vpop.eup %900  ;;  %v444_v42 = vmul.f32 1.442695, %v440_v39  ;;  %v461_v43 = vsel %vm325_vm1, %v1257_v40, 0.0 }
 0x2ad   : > { %462 = vadd.xlane.f32.xlu0 %v461_v43  ;;  %v458_v44 = vsel %vm325_vm1, %v1259_v41, 0.0  ;;  %v646_v43 = vld [vmem:[#allocation7 + $0x8] sm:$0xff] }
 0x2ae   : > { %902 = vpow2.f32 %v444_v42  ;;  %459 = vadd.xlane.f32.xlu2 %v458_v44  ;;  %v647_v42 = vld [vmem:[#allocation7 + $0x10] sm:$0xff]  ;;  %v645_v44 = vld [vmem:[#allocation7] sm:$0xff] }
 0x2b4   : > { %v1265_v45 = vpop.eup %902 }
 0x2b5   : > { %v452_v46 = vsel %vm325_vm1, %v1265_v45, 0.0 }
 0x2b6   : > { %453 = vadd.xlane.f32.xlu0 %v452_v46 }
 0x2bf   : > { %550 = vrot.lane.b32.xlu1 %v318_v12, %s1082_s14 }
 0x2c6   : > { %890 = vrot.lane.b32.xlu2 %v889_v47, %s1082_s14 }
 0x2ca   : > { %524 = vrot.lane.b32.xlu0 %v1234_v7, %s1082_s14  ;;  %s1018_s14 = scalar_lea.hbm %s1017_s11, 8 }
 0x2cb   : > { %p1019_p1 = scmp.ne.s32.totalorder %s1017_s11, %s1018_s14  ;;  %p1024_p7 = scmp.lt.s32.totalorder %s1022_s6, %s1018_s14 }
 0x2cd   : > { %p1020_p3 = pnand %p1019_p1, %p1185_p4  ;;  %p1025_p8 = por %p1024_p7, %p1023_p12 }
 0x2cf   : > { %p1021_p5 = pneg %p1020_p3 }
 0x2d1   : > { %p1026_p9 = pnand %p1025_p8, %p1021_p5 }
 0x319   : > { %v457_v48 = vpop.xlane.xlu1 %456 }
 0x31a   : > { %904 = vrcp.f32 %v457_v48  ;;  %v490_v55 = vand.u32 2147483648, %v457_v48  ;;  %vm484_vm3 = vweird.f32 %v457_v48  ;;  %v488_v60 = vand.u32 2147483647, %v457_v48 }
 0x31c   : > { %v491_v61 = vor.u32 1.1754944e-38, %v490_v55  ;;  %vm489_vm6 = vcmp.eq.f32.partialorder %v488_v60, 8.507059e+37 }
 0x320   : > { %v905_v49 = vpop.eup %904  ;;  %v463_v50 = vpop.xlane.xlu0 %462 }
 0x321   : > { %v480_v51 = vmul.f32 %v905_v49, %v457_v48  ;;  %906 = vrcp.f32 %v463_v50  ;;  %v460_v52 = vpop.xlane.xlu2 %459  ;;  %vm485_vm2 = vweird.f32 %v905_v49  ;;  %v518_v3 = vand.u32 2147483647, %v463_v50 }
 0x322   : > { %908 = vrcp.f32 %v460_v52  ;;  %vm1270_vm4 = vmor %vm484_vm3, %vm485_vm2  ;;  %v520_v4 = vand.u32 2147483648, %v463_v50  ;;  %v503_v10 = vand.u32 2147483647, %v460_v52  ;;  %v505_v11 = vand.u32 2147483648, %v460_v52 }
 0x323   : > { %v481_v53 = vsub.f32 1.0, %v480_v51  ;;  %vm514_vm8 = vweird.f32 %v463_v50  ;;  %vm499_vm10 = vweird.f32 %v460_v52  ;;  %vm519_vm11 = vcmp.eq.f32.partialorder %v518_v3, 8.507059e+37 }
 0x324   : > { %v521_v15 = vor.u32 1.1754944e-38, %v520_v4  ;;  %vm504_vm13 = vcmp.eq.f32.partialorder %v503_v10, 8.507059e+37  ;;  %v506_v19 = vor.u32 1.1754944e-38, %v505_v11 }
 0x325   : > { %v482_v54 = vmul.f32 %v905_v49, %v481_v53 }
 0x327   : > { %v907_v56 = vpop.eup %906  ;;  %v483_v57 = vadd.f32 %v905_v49, %v482_v54 }
 0x328   : > { %v909_v58 = vpop.eup %908  ;;  %v510_v59 = vmul.f32 %v907_v56, %v463_v50  ;;  %vm515_vm5 = vweird.f32 %v907_v56 }
 0x329   : > { %v495_v62 = vmul.f32 %v909_v58, %v460_v52  ;;  %v454_v63 = vpop.xlane.xlu0 %453  ;;  %v891_v0 = vpop.permute.xlu2 %890  ;;  %v487_v8 = vsel %vm1270_vm4, %v905_v49, %v483_v57  ;;  %vm500_vm7 = vweird.f32 %v909_v58  ;;  %vm516_vm9 = vmor %vm514_vm8, %vm515_vm5  ;;  %vm641_vm4 = vcmask 130048   ;;  %v895_v52 = vld [vmem:[%s1329_s4] ss:$0 sm:$0xff] }
 0x32a   : > { %v511_v2 = vsub.f32 1.0, %v510_v59  ;;  %910 = vrcp.f32 %v454_v63  ;;  %v893_v6 = vunpack.i.h.bf16 %v891_v0  ;;  %v892_v7 = vunpack.i.l.bf16 %v891_v0  ;;  %vm501_vm12 = vmor %vm499_vm10, %vm500_vm7 }
 0x32b   : > { %v496_v5 = vsub.f32 1.0, %v495_v62  ;;  %v492_v14 = vsel %vm489_vm6, %v491_v61, %v487_v8  ;;  %v475_v29 = vand.u32 2147483648, %v454_v63  ;;  %v473_v31 = vand.u32 2147483647, %v454_v63 }
 0x32c   : > { %v512_v9 = vmul.f32 %v907_v56, %v511_v2  ;;  %597 = vmatpush.msrb.mxu0 %v892_v7  ;;  %623 = vmatpush.msra.mxu1 %v893_v6  ;;  %v493_v23 = vmul.f32 %v1253_v35, %v492_v14  ;;  %vm469_vm15 = vweird.f32 %v454_v63  ;;  %vm643_vm5 = vcmask 195584  }
 0x32d   : > { %v497_v12 = vmul.f32 %v909_v58, %v496_v5  ;;  %v476_v33 = vor.u32 1.1754944e-38, %v475_v29  ;;  %vm474_vm3 = vcmp.eq.f32.partialorder %v473_v31, 8.507059e+37 }
 0x32e   : > { %v513_v13 = vadd.f32 %v907_v56, %v512_v9 }
 0x32f   : > { %v498_v16 = vadd.f32 %v909_v58, %v497_v12 }
 0x330   : > { %v911_v17 = vpop.eup %910  ;;  %v517_v18 = vsel %vm516_vm9, %v907_v56, %v513_v13 }
 0x331   : > { %v522_v20 = vsel %vm519_vm11, %v521_v15, %v517_v18  ;;  %v465_v21 = vmul.f32 %v911_v17, %v454_v63  ;;  %v551_v22 = vpop.permute.xlu1 %550  ;;  %v502_v24 = vsel %vm501_vm12, %v909_v58, %v498_v16  ;;  %vm470_vm14 = vweird.f32 %v911_v17 }
 0x332   : > { %571 = vmatpush.msrb.mxu3 %v551_v22  ;;  %v523_v25 = vmul.f32 %v1257_v40, %v522_v20  ;;  %v507_v26 = vsel %vm504_vm13, %v506_v19, %v502_v24  ;;  %vm471_vm2 = vmor %vm469_vm15, %vm470_vm14 }
 0x333   : > { %v466_v27 = vsub.f32 1.0, %v465_v21  ;;  %804 = vmatmul.msk.f32.vlgmr.msrb.gmra.mxu3 %vm325_vm1, %v493_v23  ;;  %v508_v28 = vmul.f32 %v1259_v41, %v507_v26  ;;  %v648_v41 = vld [vmem:[#allocation7 + $0x18] sm:$0xff] }
 0x334   : > { %806 = vmatmul.msk.f32.vlgmr.msra.gmra.mxu1 %vm325_vm1, %v523_v25 }
 0x335   : > { %v467_v30 = vmul.f32 %v911_v17, %v466_v27  ;;  %805 = vmatmul.msk.f32.vlgmr.msrb.gmra.mxu0 %vm325_vm1, %v508_v28 }
 0x337   : > { %v468_v32 = vadd.f32 %v911_v17, %v467_v30 }
 0x339   : > { %v472_v34 = vsel %vm471_vm2, %v911_v17, %v468_v32 }
 0x33a   : > { %v477_v35 = vsel %vm474_vm3, %v476_v33, %v472_v34 }
 0x33b   : > { %v478_v36 = vmul.f32 %v1265_v45, %v477_v35 }
 0x33c   : > { %v525_v37 = vpop.permute.xlu0 %524 }
 0x33d   : > { %545 = vmatpush.msrb.mxu2 %v525_v37 }
 0x33e   : > { %803 = vmatmul.msk.f32.vlgmr.msrb.gmra.mxu2 %vm325_vm1, %v478_v36 }
 0x33f   : > { %668 = vmatpush.msra.mxu2 %v648_v41 }
 0x341   : > { %669 = vmatpush.msra.mxu2 %v647_v42 }
 0x343   : > { %670 = vmatpush.msra.mxu2 %v646_v43 }
 0x345   : > { %671 = vmatpush.msra.mxu2 %v645_v44 }
 0x3b1   : > { %v625_v40 = vpop.f32.mrf.mxu1 }
 0x3b2   : > { %v599_v38 = vpop.f32.mrf.mxu0 }
 0x3b3   : > { %633 = vrot.lane.b32.xlu2 %v599_v38, %s1083_s27 }
 0x3b6   : > { %v573_v39 = vpop.f32.mrf.mxu3 }
 0x3b7   : > { %629 = vrot.lane.b32.xlu1 %v573_v39, %s1084_s28 }
 0x3bf   : > { %637 = vrot.lane.b32.xlu1 %v625_v40, %s1085_s29 }
 0x3c1   : > { %v547_v46 = vpop.f32.mrf.mxu2 }
 0x40d   : > { %v634_v48 = vpop.permute.xlu2 %633 }
 0x429   : > { %v630_v45 = vpop.permute.xlu1 %629 }
 0x42a   : > { %v640_v47 = vsel %vm325_vm1, %v547_v46, %v630_v45 }
 0x42b   : > { %v642_v50 = vsel %vm641_vm4, %v640_v47, %v634_v48 }
 0x431   : > { %v638_v49 = vpop.permute.xlu1 %637 }
 0x432   : > { %v644_v51 = vsel %vm643_vm5, %v642_v50, %v638_v49 }
 0x433   : > { %807 = vmatmul.msk.f32.vlgmr.msra.gmra.mxu2 %vm284_vm0, %v644_v51 }
 0x4b6   : > { %v673_v53 = vpop.f32.mrf.mxu2 }
 0x4b7   : > { %v674_v54 = vadd.f32 %v895_v52, %v673_v53 }
 0x4b9   : > { %676 = vst.msk [vmem:[%s274_s8] sm:$0xff] %vm284_vm0, %v674_v54 }
 0x4ba   : > { %1029 = shalt.err (!%p1026_p9)
}
 0x4bb   : > { %822 = dma.vmem_to_hbm [thread:$0]  (%p1185_p4), %s691_s9, 128, %s693_s10, %s678_s25  }
 0x4bc PF: > { %s704_s22 = sand.u32 1, %s1060_s18   ;;  %p1339_p10 = scmp.ge.s32.totalorder %s1072_s21, 2 }
 0x4bd   : > { %s705_s16 = scalar_lea.sflag [#allocation4], %s704_s22 }
 0x4be   : > { %p836_p13 = pnand %p1339_p10, %p1189_p6 }
 0x4c0   : > { %p837_p11 = pneg %p836_p13 }
 0x4c2   : > { %1055 = dma.done.wait (%p837_p11), %s705_s16, 128  }
 0x4c3   : > { %1057 = vsyncadd (%p837_p11), %s705_s16, 4294967168  ;;  %p19_p0 = scmp.ge.s32.totalorder %s1159_s12, 4   ;;  %s1340_s18 = smov %s1064_s19 }
 0x4c4   : > { %s1341_s19 = smov %s1068_s20  ;;  %s1342_s20 = smov %s1170_s15 }
 0x4c5   : > { %s1343_s21 = smov %s1159_s12  ;;  %21 = sbr.rel (!%p19_p0) target bundleno = 6 (0x6), region = 93 }
 0x4ca   :  { %711 = vsyncpa [#allocation3], 1 }
 0x4cb   :  { %713 = vsyncpa [#allocation3 + $0x1], 1 }
 0x4cc   :  { %714 = vsyncpa [#allocation6], 1 }
 0x4cd   :  { %715 = vsyncpa [#allocation4], 1 }
 0x4ce   :  { %717 = vsyncpa [#allocation4 + $0x1], 1 }

</bundles_post_ra>
